<compile_context>
chip_gen: v6e
topology: v6e:2x2x1
jax: 0.10.0
libtpu: 0.0.40
codegen_flags: <defaults>
</compile_context>

<pallas_src>
import jax
import jax.numpy as jnp
from jax.experimental import pallas as pl
from jax.experimental.pallas import tpu as pltpu


def _round_up(x, m):
    return (x + m - 1) // m * m


def _local_encoder_kernel(x_ref, w_ref, b_ref, o_ref):
    # x_ref: (TM, K) in the caller's dtype, w_ref: (K, TN) bf16 (resident),
    # b_ref: (1, TN) f32, o_ref: (TM, TN) out_dtype.
    x = x_ref[...].astype(w_ref.dtype)              # cast in VMEM, no HBM pass
    y = jnp.dot(x, w_ref[...], preferred_element_type=jnp.float32)
    y = y + b_ref[...]                               # bias broadcast over rows
    o_ref[...] = jnp.maximum(y, 0.0).astype(o_ref.dtype)


def prepare_local_encoder_params(weight, bias, compute_dtype=jnp.bfloat16):
    """One-time parameter prep (hoisted out of the forward pass).

    weight: (embed_size, input_size)  [PyTorch layout]
    bias:   (embed_size,)
    Returns (w_kn, b_1n, embed_size): weight transposed to (K, N_pad) and N
    padded to a multiple of 128 so output stores are lane-dense.
    """
    n, k = weight.shape
    n_pad = _round_up(n, 128)
    w_kn = jnp.zeros((k, n_pad), compute_dtype).at[:, :n].set(
        jnp.transpose(weight).astype(compute_dtype))
    b_1n = jnp.zeros((1, n_pad), jnp.float32).at[:, :n].set(
        bias.astype(jnp.float32))
    return w_kn, b_1n, n


def local_encoder_forward(x, w_kn, b_1n, embed_size, *,
                          block_m=4096, block_n=2048,
                          out_dtype=jnp.bfloat16, slice_output=True):
    """x: (..., input_size). Returns relu(x @ W.T + b).

    Default output dtype is bf16 (kernel is store-bound; halves output bytes).
    With slice_output=False the lane-dense (M, N_pad) slab is returned so a
    downstream consumer can avoid the extra HBM slicing pass.
    """
    *lead, k = x.shape
    m = 1
    for d in lead:
        m *= d
    n_pad = w_kn.shape[1]

    # Flatten leading dims; row-major reshape is a free view, no cast here.
    x2d = x.reshape(m, k)

    # VMEM budget (query the chip; fall back to a conservative 64 MiB).
    try:
        vmem_cap = pltpu.get_tpu_info().vmem_capacity_bytes
    except Exception:  # pragma: no cover - defensive
        vmem_cap = 64 * 1024 * 1024
    vmem_limit = min(96 * 1024 * 1024, (vmem_cap * 3) // 4)
    budget = (vmem_limit * 3) // 4

    # Row tile: large (amortize per-step overhead), multiple of 16, but capped
    # near M/2 so the parallel M axis has >= 2 tiles for v7x's two TCs.
    tm = max(16, min(block_m, _round_up(pl.cdiv(m, 2), 16)))
    # Column tile: multiple of 128, capped at N_pad (bounds resident weight).
    tn = min(max(128, _round_up(block_n, 128)), n_pad)

    # Clamp tiles so the double-buffered working set fits comfortably in VMEM.
    x_b = jnp.dtype(x.dtype).itemsize
    o_b = jnp.dtype(out_dtype).itemsize
    w_b = jnp.dtype(w_kn.dtype).itemsize

    def footprint(tm_, tn_):
        return 2 * (tm_ * k * x_b + tm_ * tn_ * o_b + k * tn_ * w_b + tn_ * 4)

    while footprint(tm, tn) > budget and tm > 16:
        tm = max(16, _round_up(tm // 2, 16))
    while footprint(tm, tn) > budget and tn > 128:
        tn = max(128, _round_up(tn // 2, 128))

    grid = (pl.cdiv(m, tm), pl.cdiv(n_pad, tn))  # ragged edges handled by Pallas

    out2d = pl.pallas_call(
        _local_encoder_kernel,
        out_shape=jax.ShapeDtypeStruct((m, n_pad), out_dtype),
        grid_spec=pltpu.PrefetchScalarGridSpec(
            num_scalar_prefetch=0,
            grid=grid,
            in_specs=[
                pl.BlockSpec((tm, k), lambda i, j: (i, 0)),   # streamed rows
                pl.BlockSpec((k, tn), lambda i, j: (0, j)),   # resident weight tile
                pl.BlockSpec((1, tn), lambda i, j: (0, j)),   # resident bias tile
            ],
            out_specs=pl.BlockSpec((tm, tn), lambda i, j: (i, j)),
        ),
        compiler_params=pltpu.CompilerParams(
            dimension_semantics=("parallel", "parallel"),  # M/N tiles independent
            vmem_limit_bytes=int(vmem_limit),
        ),
    )(x2d, w_kn, b_1n)

    if slice_output and embed_size != n_pad:
        # Extra HBM pass; set slice_output=False to consume the padded slab.
        out2d = out2d[:, :embed_size]
        return out2d.reshape(*lead, embed_size)
    return out2d.reshape(*lead, out2d.shape[-1])


if __name__ == "__main__":
    # Small shapes consistent with the module: Linear(input_size=32 -> embed_size=64)
    input_size, embed_size = 32, 64
    batch, seq = 2, 8

    key = jax.random.PRNGKey(0)
    kx, kw, kb = jax.random.split(key, 3)

    x = jax.random.normal(kx, (batch, seq, input_size), dtype=jnp.float32)
    # Deterministic "PyTorch-style" init (uniform in +-1/sqrt(fan_in))
    bound = 1.0 / (input_size ** 0.5)
    weight = jax.random.uniform(kw, (embed_size, input_size), jnp.float32,
                                minval=-bound, maxval=bound)
    bias = jax.random.uniform(kb, (embed_size,), jnp.float32,
                              minval=-bound, maxval=bound)

    # One-time parameter prep (transpose + lane pad) hoisted out of the forward.
    w_kn, b_1n, n_out = prepare_local_encoder_params(weight, bias)

    # Fast path: bf16 output (store-bound kernel -> halved output HBM bytes).
    out_bf16 = local_encoder_forward(x, w_kn, b_1n, n_out)
    out_bf16 = jax.block_until_ready(out_bf16)
    assert out_bf16.shape == (batch, seq, embed_size)
    assert out_bf16.dtype == jnp.bfloat16

    # f32-output path (closest to PyTorch semantics; still bf16 matmul inputs).
    out_f32 = local_encoder_forward(x, w_kn, b_1n, n_out, out_dtype=jnp.float32)
    out_f32 = jax.block_until_ready(out_f32)
    assert out_f32.shape == (batch, seq, embed_size)

    # Reference 1: same precision recipe (bf16 inputs, f32 accumulation).
    ref_bf16 = jnp.maximum(
        jnp.einsum("bsi,oi->bso",
                   x.astype(jnp.bfloat16), weight.astype(jnp.bfloat16),
                   preferred_element_type=jnp.float32) + bias, 0.0)
    assert jnp.allclose(out_f32, ref_bf16, atol=1e-4, rtol=1e-4)
    assert jnp.allclose(out_bf16.astype(jnp.float32), ref_bf16,
                        atol=2e-2, rtol=2e-2)

    # Reference 2: full f32 PyTorch semantics (loose check for bf16 inputs).
    ref_f32 = jnp.maximum(jnp.einsum("bsi,oi->bso", x, weight) + bias, 0.0)
    assert jnp.allclose(out_f32, ref_f32, atol=5e-2, rtol=5e-2)

    print("KERNEL_OK")
</pallas_src>

<mosaic_0001>
module attributes {stable_mosaic.version = 11 : i64} {
  func.func @_local_encoder_kernel(%arg0: i32, %arg1: i32, %arg2: memref<16x32xf32, #tpu.memory_space<vmem>>, %arg3: memref<32x128xbf16, #tpu.memory_space<vmem>>, %arg4: memref<1x128xf32, #tpu.memory_space<vmem>>, %arg5: memref<16x128xbf16, #tpu.memory_space<vmem>>) attributes {dimension_semantics = [#tpu.dimension_semantics<parallel>, #tpu.dimension_semantics<parallel>], iteration_bounds = array<i64: 1, 1>, scalar_prefetch = 0 : i64, scratch_operands = 0 : i64, tpu.core_type = #tpu.core_type<tc>, window_params = [{transform_indices = @transform_0, window_bounds = array<i64: 16, 32>}, {transform_indices = @transform_1, window_bounds = array<i64: 32, 128>}, {transform_indices = @transform_2, window_bounds = array<i64: 1, 128>}, {transform_indices = @transform_3, window_bounds = array<i64: 16, 128>}]} {
    %c0 = arith.constant 0 : index
    %c0_0 = arith.constant 0 : index
    %0 = vector.load %arg2[%c0, %c0_0] : memref<16x32xf32, #tpu.memory_space<vmem>>, vector<16x32xf32>
    %1 = arith.truncf %0 : vector<16x32xf32> to vector<16x32xbf16>
    %c0_1 = arith.constant 0 : index
    %c0_2 = arith.constant 0 : index
    %2 = vector.load %arg3[%c0_1, %c0_2] : memref<32x128xbf16, #tpu.memory_space<vmem>>, vector<32x128xbf16>
    %cst = arith.constant dense<0.000000e+00> : vector<16x128xf32>
    %3 = tpu.matmul %1, %2, %cst {dimension_numbers = #tpu.dot_dimension_numbers<[1], [0], [0], [1], [0, 0, 1, 1], [], []>} : vector<16x32xbf16>, vector<32x128xbf16>, vector<16x128xf32> -> vector<16x128xf32>
    %c0_3 = arith.constant 0 : index
    %c0_4 = arith.constant 0 : index
    %4 = vector.load %arg4[%c0_3, %c0_4] : memref<1x128xf32, #tpu.memory_space<vmem>>, vector<1x128xf32>
    %5 = vector.broadcast %4 : vector<1x128xf32> to vector<16x128xf32>
    %6 = arith.addf %3, %5 : vector<16x128xf32>
    %cst_5 = arith.constant 0.000000e+00 : f32
    %7 = vector.broadcast %cst_5 : f32 to vector<16x128xf32>
    %8 = arith.maximumf %6, %7 : vector<16x128xf32>
    %9 = arith.truncf %8 : vector<16x128xf32> to vector<16x128xbf16>
    %c0_6 = arith.constant 0 : index
    %c0_7 = arith.constant 0 : index
    %10 = vector.load %arg5[%c0_6, %c0_7] : memref<16x128xbf16, #tpu.memory_space<vmem>>, vector<16x128xbf16>
    tpu.vector_store %arg5[%c0_6, %c0_7], %9 {strides = array<i32>} : memref<16x128xbf16, #tpu.memory_space<vmem>>, vector<16x128xbf16>,
    return
  }
  func.func @transform_0(%arg0: i32, %arg1: i32) -> (i32, i32) {
    %c0_i32 = arith.constant 0 : i32
    %c0_i32_0 = arith.constant 0 : i32
    return %arg0, %c0_i32 : i32, i32
  }
  func.func @transform_1(%arg0: i32, %arg1: i32) -> (i32, i32) {
    %c0_i32 = arith.constant 0 : i32
    %c0_i32_0 = arith.constant 0 : i32
    return %c0_i32, %arg1 : i32, i32
  }
  func.func @transform_2(%arg0: i32, %arg1: i32) -> (i32, i32) {
    %c0_i32 = arith.constant 0 : i32
    %c0_i32_0 = arith.constant 0 : i32
    return %c0_i32, %arg1 : i32, i32
  }
  func.func @transform_3(%arg0: i32, %arg1: i32) -> (i32, i32) {
    %c0_i32 = arith.constant 0 : i32
    return %arg0, %arg1 : i32, i32
  }
}

</mosaic_0001>

<bundles_post_ra>
// kernel: tpu_custom_call.1
= control target key start
LH: loop header
LB: loop body
LE: loop exit
PB: predicated region body
PF: predicated region fallthrough
CT: control target
= control target key end

     0   :  { %8 = vsyncpa [#allocation3], 0  ;;  %s293_s0 = inlined_call_operand.hbm [shape: f32[16,32], index: 0, kind: input, shape index: {}]   ;;  %s294_s1 = inlined_call_operand.hbm [shape: bf16[32,128], index: 1, kind: input, shape index: {}]   ;;  %s295_s2 = inlined_call_operand.vmem [shape: f32[1,128], index: 2, kind: input, shape index: {}]   ;;  %s296_s3 = inlined_call_operand.hbm [shape: bf16[16,128], index: 3, kind: output, shape index: {}]  }
   0x1   :  { %9 = vsyncpa [#allocation6], 0 }
   0x2   :  { %10 = vsyncpa [#allocation4], 0  ;;  %s246_s12 = smov [#allocation2]  }
   0x3   :  { %s16_s13 = sshll.u32 %s246_s12, 4  ;;  %s17_s13 = int_to_ptr.vmem [resolvable:$true] %s16_s13 }
   0x4   :  { %s188_s14 = scalar_lea.vmem %s17_s13, 256  ;;  %p193_p1 = scmp.lt.s32.totalorder %s17_s13, %s17_s13 }
   0x5   :  { %p189_p0 = scmp.ne.s32.totalorder %s17_s13, %s188_s14  ;;  %p194_p2 = scmp.lt.s32.totalorder %s188_s14, %s188_s14 }
   0x7   :  { %p195_p3 = por %p194_p2, %p193_p1 }
   0x9   :  { %p196_p4 = pnand %p195_p3, %p189_p0 }
   0xb   :  { %199 = shalt.err (!%p196_p4)
}
   0xc   :  { %s247_s15 = smov 128   ;;  %s248_s16 = smov 8  }
   0xd   :  { %22 = dma.hbm_to_vmem [thread:$0]  %s293_s0, 256, %s17_s13, [#allocation3], %s247_s15, %s247_s15, %s248_s16  }
   0xe   :  { %s249_s19 = smov [#allocation5]  }
   0xf   :  { %s28_s20 = sshll.u32 %s249_s19, 4  ;;  %s29_s20 = int_to_ptr.vmem [resolvable:$true] %s28_s20 }
  0x10   :  { %s208_s21 = scalar_lea.vmem %s29_s20, 256  ;;  %p213_p6 = scmp.lt.s32.totalorder %s29_s20, %s29_s20 }
  0x11   :  { %p209_p5 = scmp.ne.s32.totalorder %s29_s20, %s208_s21  ;;  %p214_p7 = scmp.lt.s32.totalorder %s208_s21, %s208_s21 }
  0x13   :  { %p215_p8 = por %p214_p7, %p213_p6 }
  0x15   :  { %p216_p9 = pnand %p215_p8, %p209_p5 }
  0x17   :  { %219 = shalt.err (!%p216_p9)
}
  0x18   :  { %s250_s22 = smov 64   ;;  %s251_s23 = smov 4  }
  0x19   :  { %34 = dma.hbm_to_vmem [thread:$0]  %s294_s1, 256, %s29_s20, [#allocation6], %s250_s22, %s250_s22, %s251_s23  }
  0x1a   :  { %240 = dma.done.wait [#allocation3], 256  }
  0x1b   :  { %241 = vsyncadd [#allocation3], 4294967040 }
  0x1c   :  { %242 = dma.done.wait [#allocation6], 256  }
  0x1d   :  { %243 = vsyncadd [#allocation6], 4294967040  ;;  %v252_v0 = vmov 0.0   ;;  %vm253_vm0 = vmmov 0   ;;  %v178_v1 = vld [vmem:[#allocation5 + $0x8] sm:$0xff]   ;;  %v179_v2 = vld [vmem:[#allocation5] sm:$0xff]  }
  0x1e   :  { %161 = vmatprep.subr.bf16.mxu0 %v252_v0  ;;  %165 = vmatprep.mubr.msk.bf16.mxu0 %vm253_vm0, %v252_v0  ;;  %v44_v3 = vld [vmem:[#allocation2] sm:$0xff]  ;;  %v45_v4 = vld [vmem:[#allocation2 + $0x8] sm:$0xff]  ;;  %vm70_vm1 = vcmask 261120   ;;  %s254_s26 = smov [#allocation7]  }
  0x1f   :  { %162 = vmatpush3.bf16.msra.mxu0 %v178_v1  ;;  %v46_v5 = vpack.c.bf16 %v45_v4, %v44_v3  ;;  %v145_v6 = vld [vmem:[%s295_s2] ss:$0 sm:$0xff]  ;;  %s132_s27 = sshll.u32 %s254_s26, 4  ;;  %s133_s27 = int_to_ptr.vmem [resolvable:$true] %s132_s27 }
  0x20   :  { %163 = vmatprep.subr.bf16.mxu0 %v252_v0  ;;  %s220_s28 = scalar_lea.vmem %s133_s27, 128  ;;  %p225_p11 = scmp.lt.s32.totalorder %s133_s27, %s133_s27 }
  0x21   :  { %p221_p10 = scmp.ne.s32.totalorder %s133_s27, %s220_s28  ;;  %p226_p12 = scmp.lt.s32.totalorder %s220_s28, %s220_s28 }
  0x23   :  { %164 = vmatpush3.bf16.msra.mxu0 %v179_v2  ;;  %p227_p13 = por %p226_p12, %p225_p11 }
  0x25   :  { %p228_p0 = pnand %p227_p13, %p221_p10 }
  0x26   :  { %166 = vmatmul.mubr.msk.bf16.vlgmr.msra.gmra.mxu0 %vm70_vm1, %v46_v5 }
  0xe6   :  { %v108_v7 = vpop.f32.mrf.mxu0 }
  0xe7   :  { %v109_v9 = vadd.f32 %v145_v6, %v108_v7 }
  0xe8   :  { %v167_v8 = vpop.f32.mrf.mxu0 }
  0xe9   :  { %v115_v13 = vmax.f32 %v109_v9, 0.0 }
  0xea   :  { %v111_v10 = vpop.f32.mrf.mxu0 }
  0xeb   :  { %v112_v11 = vadd.f32 %v145_v6, %v111_v10 }
  0xec   :  { %v168_v12 = vpop.f32.mrf.mxu0 }
  0xed   :  { %v116_v14 = vmax.f32 %v112_v11, 0.0 }
  0xef   :  { %v156_v15 = vpack.c.bf16 %v116_v14, %v115_v13 }
  0xf1   :  { %157 = vst [vmem:[#allocation7] sm:$0xff] %v156_v15  }
  0xf2   :  { %231 = shalt.err (!%p228_p0)
}
  0xf3   :  { %138 = dma.vmem_to_hbm [thread:$0]  %s133_s27, 128, %s296_s3, [#allocation4], %s250_s22, %s250_s22, %s251_s23  }
  0xf4   :  { %244 = dma.done.wait [#allocation4], 128  }
  0xf5   :  { %245 = vsyncadd [#allocation4], 4294967168 }
  0xf6   :  { %142 = vsyncpa [#allocation3], 1 }
  0xf7   :  { %143 = vsyncpa [#allocation6], 1 }
  0xf8   :  { %144 = vsyncpa [#allocation4], 1 }

</bundles_post_ra>
